<compile_context>
chip_gen: v7x
topology: tpu7x:2x2x1
jax: 0.10.0
libtpu: 0.0.40
codegen_flags: <defaults>
</compile_context>

<pallas_src>
import jax
import jax.numpy as jnp
from jax.experimental import pallas as pl
from jax.experimental.pallas import tpu as pltpu


# -----------------------------------------------------------------------------
# Kernel
# -----------------------------------------------------------------------------
def _palette_kernel(cm_ref, colors_ref, o_ref):
    # cm_ref    : (TM, N)   tile of the flattened class matrix (f32 or bf16)
    # colors_ref: (N, 128)  pre-sigmoided color table, zero-padded on lanes
    #                       (resident; constant index_map)
    # o_ref     : (TM, 3)   output tile
    x = cm_ref[...].astype(jnp.float32) * 3.0

    # Numerically-stable softmax along the color axis, but defer the 1/sum
    # normalization until after the matmul (row-local, mathematically equal).
    m = jnp.max(x, axis=-1, keepdims=True)
    e = jnp.exp(x - m)                                   # (TM, N) unnormalized
    denom = jnp.sum(e, axis=-1, keepdims=True)           # (TM, 1)

    # (TM, N) @ (N, 128) on the MXU; padded columns are zeros.
    acc = jnp.dot(e, colors_ref[...], preferred_element_type=jnp.float32)

    # Normalize only the 3 useful output lanes, clip for exact fidelity with
    # the PyTorch module (guards tiny FP overshoot above 1.0).
    rgb = acc[:, :3] * pl.reciprocal(denom, approx=False)
    o_ref[...] = jnp.clip(rgb, 0.0, 1.0).astype(o_ref.dtype)


# -----------------------------------------------------------------------------
# Wrapper
# -----------------------------------------------------------------------------
def _round_up(x, m):
    return ((x + m - 1) // m) * m


def _vmem_capacity_bytes():
    """Physical VMEM per TensorCore; conservative 64 MiB fallback (v7x)."""
    try:
        info = pltpu.get_tpu_info()
        cap = getattr(info, "vmem_capacity_bytes", None)
        if cap:
            return int(cap)
    except Exception:
        pass
    return 64 * 1024 * 1024


def palette_image_forward(class_matrix, class_colors, *, min_step_bytes=2 << 20):
    """class_matrix: (H, W, N) f32 or bf16, class_colors: (N, 3) -> (H, W, 3) f32."""
    H, W, N = class_matrix.shape
    assert class_colors.shape == (N, 3)
    HW = H * W

    cm_flat = class_matrix.reshape(HW, N)
    in_itemsize = jnp.dtype(cm_flat.dtype).itemsize

    # Hoisted out of the kernel: tiny (N, 3) op.  Zero-pad to 128 lanes so the
    # in-kernel contraction is the canonical MXU shape.
    sig_colors = jax.nn.sigmoid(class_colors.astype(jnp.float32))
    colors_pad = jnp.zeros((N, 128), jnp.float32).at[:, :3].set(sig_colors)

    # ---- tile-size selection (budget-driven, generation-aware) -------------
    lane_N = _round_up(N, 128)
    align = 8 if in_itemsize >= 4 else 16          # bf16 packs 16 rows/sublane-pair

    vmem_cap = _vmem_capacity_bytes()
    footprint_budget = int(vmem_cap * 2 // 5)      # ~40% of physical VMEM

    color_bytes = 2 * _round_up(N, 8) * 128 * 4                    # resident table (dbl-buf)
    per_row_bytes = 2 * lane_N * in_itemsize + 2 * 128 * 4         # in + out, dbl-buffered

    tm_cap_vmem = max((footprint_budget - color_bytes) // per_row_bytes, align)
    tm_budget = max(min_step_bytes // (lane_N * in_itemsize), align)  # >= ~2 MiB / step
    tm = min(int(tm_budget), int(tm_cap_vmem))
    # Keep >= ~4 grid steps so the parallel axis can shard across v7x's 2 TCs.
    tm = min(tm, _round_up(pl.cdiv(HW, 4), align))
    tm = max(align, (tm // align) * align)
    tm = min(tm, _round_up(HW, align))
    grid = (pl.cdiv(HW, tm),)

    footprint = tm * per_row_bytes + color_bytes
    vmem_limit = int(min(max(footprint * 2, 32 << 20), vmem_cap * 3 // 4))

    compiler_params = pltpu.CompilerParams(
        dimension_semantics=("parallel",),
        vmem_limit_bytes=vmem_limit,
    )

    out_flat = pl.pallas_call(
        _palette_kernel,
        out_shape=jax.ShapeDtypeStruct((HW, 3), jnp.float32),
        grid_spec=pltpu.PrefetchScalarGridSpec(
            num_scalar_prefetch=0,
            grid=grid,
            in_specs=[
                pl.BlockSpec((tm, N), lambda i: (i, 0)),    # streamed pixel rows
                pl.BlockSpec((N, 128), lambda i: (0, 0)),   # resident padded color table
            ],
            out_specs=pl.BlockSpec((tm, 3), lambda i: (i, 0)),
        ),
        compiler_params=compiler_params,
    )(cm_flat, colors_pad)

    return out_flat.reshape(H, W, 3)


# -----------------------------------------------------------------------------
# Reference + checks
# -----------------------------------------------------------------------------
def palette_image_reference(class_matrix, class_colors):
    """Plain-JAX reference for correctness checking."""
    p = jax.nn.softmax(3.0 * class_matrix.astype(jnp.float32), axis=2)
    c = jax.nn.sigmoid(class_colors.astype(jnp.float32))
    return jnp.clip(jnp.einsum("hwn,nc->hwc", p, c), 0.0, 1.0)


def _check(H, W, N_COLORS, seed, dtype=jnp.float32):
    key = jax.random.PRNGKey(seed)
    k_cm, k_cc = jax.random.split(key)
    # Consistent with the module __init__: class_matrix ~ N(0,1),
    # class_colors ~ N(0,1) + 0.5.
    class_matrix = jax.random.normal(k_cm, (H, W, N_COLORS), dtype=jnp.float32).astype(dtype)
    class_colors = jax.random.normal(k_cc, (N_COLORS, 3), dtype=jnp.float32) + 0.5

    out = jax.block_until_ready(palette_image_forward(class_matrix, class_colors))
    # Reference consumes the same (possibly bf16-rounded) values, upcast to f32,
    # matching the in-kernel cast, so the tight tolerance holds for bf16 too.
    ref = jax.block_until_ready(palette_image_reference(class_matrix, class_colors))

    assert out.shape == (H, W, 3), out.shape
    err = float(jnp.max(jnp.abs(out - ref)))
    assert jnp.allclose(out, ref, atol=1e-5, rtol=1e-5), err


if __name__ == "__main__":
    # Small deterministic setups:
    #   - 16x16, N=32     : aligned path
    #   - 15x17, N=32     : ragged H*W -> masked partial last row-block
    #   - 9x11,  N=130    : n_colors not a multiple of 8/128 (full-dim block)
    #   - 16x16, N=32 bf16: read-bound bf16 input path (16-aligned tile)
    _check(16, 16, 32, seed=0)
    _check(15, 17, 32, seed=0)
    _check(9, 11, 130, seed=1)
    _check(16, 16, 32, seed=2, dtype=jnp.bfloat16)
    print("KERNEL_OK")
</pallas_src>

<mosaic_0001>
module attributes {stable_mosaic.version = 11 : i64} {
  func.func @_palette_kernel(%arg0: i32, %arg1: memref<64x32xf32, #tpu.memory_space<vmem>>, %arg2: memref<32x128xf32, #tpu.memory_space<vmem>>, %arg3: memref<64x3xf32, #tpu.memory_space<vmem>>) attributes {dimension_semantics = [#tpu.dimension_semantics<parallel>], iteration_bounds = array<i64: 4>, scalar_prefetch = 0 : i64, scratch_operands = 0 : i64, tpu.core_type = #tpu.core_type<tc>, window_params = [{transform_indices = @transform_0, window_bounds = array<i64: 64, 32>}, {pipeline_mode = #tpu.pipeline_mode<synchronous>, transform_indices = @transform_1, window_bounds = array<i64: 32, 128>}, {transform_indices = @transform_2, window_bounds = array<i64: 64, 3>}]} {
    %c0 = arith.constant 0 : index
    %c0_0 = arith.constant 0 : index
    %0 = vector.load %arg1[%c0, %c0_0] : memref<64x32xf32, #tpu.memory_space<vmem>>, vector<64x32xf32>
    %cst = arith.constant 3.000000e+00 : f32
    %1 = vector.broadcast %cst : f32 to vector<64x32xf32>
    %2 = arith.mulf %0, %1 : vector<64x32xf32>
    %cst_1 = arith.constant dense<0xFF800000> : vector<64xf32>
    %3 = vector.multi_reduction <maximumf>, %2, %cst_1 [1] : vector<64x32xf32> to vector<64xf32>
    %4 = vector.shape_cast %3 : vector<64xf32> to vector<64x1xf32>
    %5 = vector.broadcast %4 : vector<64x1xf32> to vector<64x32xf32>
    %6 = arith.subf %2, %5 : vector<64x32xf32>
    %7 = math.exp %6 : vector<64x32xf32>
    %cst_2 = arith.constant dense<0.000000e+00> : vector<64xf32>
    %8 = vector.multi_reduction <add>, %7, %cst_2 [1] : vector<64x32xf32> to vector<64xf32>
    %9 = vector.shape_cast %8 : vector<64xf32> to vector<64x1xf32>
    %c0_3 = arith.constant 0 : index
    %c0_4 = arith.constant 0 : index
    %10 = vector.load %arg2[%c0_3, %c0_4] : memref<32x128xf32, #tpu.memory_space<vmem>>, vector<32x128xf32>
    %cst_5 = arith.constant dense<0.000000e+00> : vector<64x128xf32>
    %11 = tpu.matmul %7, %10, %cst_5 {dimension_numbers = #tpu.dot_dimension_numbers<[1], [0], [0], [1], [0, 0, 1, 1], [], []>} : vector<64x32xf32>, vector<32x128xf32>, vector<64x128xf32> -> vector<64x128xf32>
    %12 = vector.extract_strided_slice %11 {offsets = [0, 0], sizes = [64, 3], strides = [1, 1]} : vector<64x128xf32> to vector<64x3xf32>
    %13 = tpu.reciprocal %9 : vector<64x1xf32> -> vector<64x1xf32>
    %14 = vector.broadcast %13 : vector<64x1xf32> to vector<64x3xf32>
    %15 = arith.mulf %12, %14 : vector<64x3xf32>
    %cst_6 = arith.constant 0.000000e+00 : f32
    %cst_7 = arith.constant 1.000000e+00 : f32
    %16 = vector.broadcast %cst_6 : f32 to vector<64x3xf32>
    %17 = arith.maximumf %16, %15 : vector<64x3xf32>
    %18 = vector.broadcast %cst_7 : f32 to vector<64x3xf32>
    %19 = arith.minimumf %18, %17 : vector<64x3xf32>
    %c0_8 = arith.constant 0 : index
    %c0_9 = arith.constant 0 : index
    %20 = vector.load %arg3[%c0_8, %c0_9] : memref<64x3xf32, #tpu.memory_space<vmem>>, vector<64x3xf32>
    tpu.vector_store %arg3[%c0_8, %c0_9], %19 {strides = array<i32>} : memref<64x3xf32, #tpu.memory_space<vmem>>, vector<64x3xf32>,
    return
  }
  func.func @transform_0(%arg0: i32) -> (i32, i32) {
    %c0_i32 = arith.constant 0 : i32
    %c0_i32_0 = arith.constant 0 : i32
    return %arg0, %c0_i32 : i32, i32
  }
  func.func @transform_1(%arg0: i32) -> (i32, i32) {
    %c0_i32 = arith.constant 0 : i32
    %c0_i32_0 = arith.constant 0 : i32
    %c0_i32_1 = arith.constant 0 : i32
    return %c0_i32, %c0_i32_0 : i32, i32
  }
  func.func @transform_2(%arg0: i32) -> (i32, i32) {
    %c0_i32 = arith.constant 0 : i32
    %c0_i32_0 = arith.constant 0 : i32
    return %arg0, %c0_i32 : i32, i32
  }
}

</mosaic_0001>

<bundles_post_ra>
// kernel: tpu_custom_call.1
= control target key start
LH: loop header
LB: loop body
LE: loop exit
PB: predicated region body
PF: predicated region fallthrough
CT: control target
= control target key end

     0   :  { %s592_s9 = smov 0   ;;  %s670_s0 = inlined_call_operand.vmem [shape: f32[256,32], index: 0, kind: input, shape index: {}]   ;;  %s671_s1 = inlined_call_operand.vmem [shape: f32[32,128], index: 1, kind: input, shape index: {}]   ;;  %s672_s2 = inlined_call_operand.vmem [shape: f32[256,3], index: 2, kind: output, shape index: {}]  }
   0x1 LB: > { %s466_s10 = sadd.s32 4294967295, %s575_s9   ;;  %p470_p0 = scmp.ge.s32.totalorder %s575_s9, 1  ;;  %s575_s9 = sphi %s592_s9, %s12_s9  }
   0x2   : > { %p113_p1 = scmp.lt.s32.totalorder %s575_s9, 5 }
   0x4   : > { %p114_p2 = pnand %p470_p0, %p113_p1 }
   0x5   : > { %s471_s11 = sshll.u32 (!%p114_p2), %s466_s10, 3  ;;  %vm163_vm0 = vcmask (!%p114_p2), 261120   ;;  %v236_v24 = vld [vmem:[%s671_s1] sm:$0xff] (!%p114_p2)  ;;  %v237_v25 = vld [vmem:[%s671_s1 + $0x8] sm:$0xff] (!%p114_p2)  ;;  %v238_v27 = vld [vmem:[%s671_s1 + $0x10] sm:$0xff] (!%p114_p2)  ;;  %vm401_vm1 = vcmask (!%p114_p2), 23552  }
   0x6   : > { %117 = sbr.rel (%p114_p2) target bundleno = 410 (0x19a), region = 28  ;;  %p136_p3 = scmp.lt.s32.totalorder (!%p114_p2), %s471_s11, 31  ;;  %v517_v26 = vpack.c.bf16 (!%p114_p2), %v237_v25, %v236_v24  ;;  %v239_v28 = vld [vmem:[%s671_s1 + $0x18] sm:$0xff] (!%p114_p2) }
   0x7   : > { %v521_v29 = vpack.c.bf16 (!%p114_p2), %v239_v28, %v238_v27 }
   0x8   : > { %518 = vmatprep.subr.bf16.mxu0 (!%p114_p2), %v517_v26  ;;  %525 = vmatprep.subr.bf16.mxu1 (!%p114_p2), %v517_v26 }
   0x9   : > { %520 = vmatpush3.bf16.msra.mxu0 (!%p114_p2), %v517_v26  ;;  %527 = vmatpush3.bf16.msra.mxu1 (!%p114_p2), %v517_v26 }
   0xa   : > { %522 = vmatprep.subr.bf16.mxu0 (!%p114_p2), %v521_v29  ;;  %526 = vmatprep.subr.bf16.mxu1 (!%p114_p2), %v521_v29 }
   0xd   : > { %s674_s11 = smov (!%p136_p3, %s471_s11), 31  ;;  %524 = vmatpush3.bf16.msra.mxu0 %v521_v29  ;;  %528 = vmatpush3.bf16.msra.mxu1 %v521_v29 }
   0xe   : > { %s472_s12 = sshll.u32 %s674_s11, 3 }
   0xf   : > { %s139_s15 = scalar_lea.vmem %s670_s0, %s472_s12  ;;  %s649_s26 = scalar_lea.vmem %s672_s2, %s472_s12 }
  0x10   : > { %v148_v0 = vld [vmem:[%s139_s15 + $0x8] sm:$0xff]  ;;  %v147_v1 = vld [vmem:[%s139_s15] sm:$0xff]  ;;  %v153_v8 = vld [vmem:[%s139_s15 + $0x30] sm:$0xff] }
  0x11   : > { %v152_v2 = vld [vmem:[%s139_s15 + $0x28] sm:$0xff]  ;;  %v156_v3 = vmul.f32 3.0, %v148_v0  ;;  %v155_v4 = vmul.f32 3.0, %v147_v1  ;;  %v151_v6 = vld [vmem:[%s139_s15 + $0x20] sm:$0xff]  ;;  %v149_v9 = vld [vmem:[%s139_s15 + $0x10] sm:$0xff]  ;;  %v161_v14 = vmul.f32 3.0, %v153_v8 }
  0x12   : > { %v160_v5 = vmul.f32 3.0, %v152_v2  ;;  %v159_v7 = vmul.f32 3.0, %v151_v6  ;;  %v157_v15 = vmul.f32 3.0, %v149_v9  ;;  %v154_v16 = vld [vmem:[%s139_s15 + $0x38] sm:$0xff] }
  0x13   : > { %v167_v10 = vsel %vm163_vm0, %v156_v3, -inf  ;;  %v164_v11 = vsel %vm163_vm0, %v155_v4, -inf  ;;  %v150_v17 = vld [vmem:[%s139_s15 + $0x18] sm:$0xff]  ;;  %v182_v18 = vsel %vm163_vm0, %v161_v14, -inf  ;;  %v162_v20 = vmul.f32 3.0, %v154_v16 }
  0x14   : > { %168 = vmax.xlane.f32.xlu1 %v167_v10  ;;  %165 = vmax.xlane.f32.xlu0 %v164_v11  ;;  %v179_v12 = vsel %vm163_vm0, %v160_v5, -inf  ;;  %v176_v13 = vsel %vm163_vm0, %v159_v7, -inf  ;;  %v170_v19 = vsel %vm163_vm0, %v157_v15, -inf  ;;  %v158_v21 = vmul.f32 3.0, %v150_v17 }
  0x15   : > { %v185_v22 = vsel %vm163_vm0, %v162_v20, -inf }
  0x16   : > { %v173_v23 = vsel %vm163_vm0, %v158_v21, -inf }
  0x18   : > { %180 = vmax.xlane.f32.xlu1 %v179_v12  ;;  %177 = vmax.xlane.f32.xlu0 %v176_v13 }
  0x1c   : > { %183 = vmax.xlane.f32.xlu1 %v182_v18  ;;  %171 = vmax.xlane.f32.xlu0 %v170_v19 }
  0x20   : > { %186 = vmax.xlane.f32.xlu1 %v185_v22  ;;  %174 = vmax.xlane.f32.xlu0 %v173_v23 }
  0xa1   : > { %v169_v30 = vpop.xlane.xlu1 %168  ;;  %v166_v31 = vpop.xlane.xlu0 %165 }
  0xa2   : > { %v189_v32 = vsub.f32 %v156_v3, %v169_v30  ;;  %v188_v33 = vsub.f32 %v155_v4, %v166_v31 }
  0xa4   : > { %v198_v34 = vmul.f32 1.442695, %v189_v32  ;;  %v196_v35 = vmul.f32 1.442695, %v188_v33 }
  0xa5   : > { %v181_v36 = vpop.xlane.xlu1 %180  ;;  %v178_v37 = vpop.xlane.xlu0 %177 }
  0xa6   : > { %537 = vpow2.f32 %v198_v34  ;;  %v193_v38 = vsub.f32 %v160_v5, %v181_v36  ;;  %v192_v39 = vsub.f32 %v159_v7, %v178_v37 }
  0xa7   : > { %539 = vpow2.f32 %v196_v35 }
  0xa8   : > { %v206_v40 = vmul.f32 1.442695, %v193_v38  ;;  %v204_v41 = vmul.f32 1.442695, %v192_v39 }
  0xa9   : > { %v184_v42 = vpop.xlane.xlu1 %183  ;;  %v172_v43 = vpop.xlane.xlu0 %171 }
  0xaa   : > { %541 = vpow2.f32 %v206_v40  ;;  %v194_v44 = vsub.f32 %v161_v14, %v184_v42  ;;  %v190_v45 = vsub.f32 %v157_v15, %v172_v43 }
  0xab   : > { %543 = vpow2.f32 %v204_v41 }
  0xac   : > { %v208_v46 = vmul.f32 1.442695, %v194_v44  ;;  %v200_v47 = vmul.f32 1.442695, %v190_v45 }
  0xad   : > { %v187_v48 = vpop.xlane.xlu1 %186  ;;  %v175_v49 = vpop.xlane.xlu0 %174 }
  0xae   : > { %545 = vpow2.f32 %v208_v46  ;;  %v195_v50 = vsub.f32 %v162_v20, %v187_v48  ;;  %v191_v51 = vsub.f32 %v158_v21, %v175_v49 }
  0xaf   : > { %547 = vpow2.f32 %v200_v47 }
  0xb0   : > { %v538_v52 = vpop.eup %537  ;;  %v210_v53 = vmul.f32 1.442695, %v195_v50  ;;  %v202_v54 = vmul.f32 1.442695, %v191_v51 }
  0xb1   : > { %v540_v55 = vpop.eup %539  ;;  %v215_v56 = vsel %vm163_vm0, %v538_v52, 0.0 }
  0xb2   : > { %549 = vpow2.f32 %v210_v53  ;;  %505 = vmatprep.mubr.msk.f32.mxu0 %vm163_vm0, %v540_v55  ;;  %216 = vadd.xlane.f32.xlu1 %v215_v56  ;;  %v212_v57 = vsel %vm163_vm0, %v540_v55, 0.0 }
  0xb3   : > { %551 = vpow2.f32 %v202_v54  ;;  %506 = vmatmul.mubr.msk.f32.vlgmr.msra.gmra.mrb[0].mxu0 %vm163_vm0, %v538_v52  ;;  %213 = vadd.xlane.f32.xlu0 %v212_v57 }
  0xb4   : > { %v542_v58 = vpop.eup %541 }
  0xb5   : > { %v544_v59 = vpop.eup %543  ;;  %v227_v4 = vsel %vm163_vm0, %v542_v58, 0.0 }
  0xb6   : > { %511 = vmatprep.mubr.msk.f32.mxu1 %vm163_vm0, %v544_v59  ;;  %v224_v1 = vsel %vm163_vm0, %v544_v59, 0.0 }
  0xb7   : > { %512 = vmatmul.mubr.msk.f32.vlgmr.msra.gmra.mrb[0].mxu1 %vm163_vm0, %v542_v58 }
  0xb8   : > { %v546_v60 = vpop.eup %545 }
  0xb9   : > { %v548_v61 = vpop.eup %547  ;;  %514 = vmatprep.mubr.msk.f32.mxu1 %vm163_vm0, %v546_v60  ;;  %v230_v3 = vsel %vm163_vm0, %v546_v60, 0.0 }
  0xba   : > { %508 = vmatprep.mubr.msk.f32.mxu0 %vm163_vm0, %v548_v61  ;;  %v218_v62 = vsel %vm163_vm0, %v548_v61, 0.0 }
  0xbb   : > { %219 = vadd.xlane.f32.xlu0 %v218_v62 }
  0xbc   : > { %v550_v63 = vpop.eup %549 }
  0xbd   : > { %v552_v0 = vpop.eup %551  ;;  %515 = vmatmul.mubr.msk.f32.gmra.mrb[2].mxu1 %vm163_vm0, %v550_v63  ;;  %v233_v5 = vsel %vm163_vm0, %v550_v63, 0.0 }
  0xbe   : > { %509 = vmatmul.mubr.msk.f32.gmra.mrb[2].mxu0 %vm163_vm0, %v552_v0  ;;  %v221_v2 = vsel %vm163_vm0, %v552_v0, 0.0 }
  0xbf   : > { %225 = vadd.xlane.f32.xlu0 %v224_v1  ;;  %222 = vadd.xlane.f32.xlu1 %v221_v2 }
  0xc3   : > { %231 = vadd.xlane.f32.xlu0 %v230_v3  ;;  %228 = vadd.xlane.f32.xlu1 %v227_v4 }
  0xc7   : > { %234 = vadd.xlane.f32.xlu1 %v233_v5 }
 0x13f   : > { %v217_v6 = vpop.xlane.xlu1 %216 }
 0x140   : > { %v214_v7 = vpop.xlane.xlu0 %213  ;;  %553 = vrcp.f32 %v217_v6 }
 0x141   : > { %555 = vrcp.f32 %v214_v7 }
 0x148   : > { %v220_v9 = vpop.xlane.xlu0 %219 }
 0x14a   : > { %v554_v14 = vpop.eup %553 }
 0x14b   : > { %v556_v16 = vpop.eup %555 }
 0x14c   : > { %v223_v8 = vpop.xlane.xlu1 %222  ;;  %v226_v11 = vpop.xlane.xlu0 %225 }
 0x150   : > { %v229_v10 = vpop.xlane.xlu1 %228  ;;  %v232_v13 = vpop.xlane.xlu0 %231 }
 0x151   : > { %557 = vrcp.f32 %v229_v10 }
 0x152   : > { %559 = vrcp.f32 %v226_v11 }
 0x153   : > { %561 = vrcp.f32 %v223_v8 }
 0x154   : > { %v235_v12 = vpop.xlane.xlu1 %234 }
 0x155   : > { %563 = vrcp.f32 %v235_v12 }
 0x156   : > { %565 = vrcp.f32 %v232_v13 }
 0x157   : > { %567 = vrcp.f32 %v220_v9 }
 0x15b   : > { %v558_v21 = vpop.eup %557 }
 0x15c   : > { %v560_v24 = vpop.eup %559 }
 0x15d   : > { %v562_v32 = vpop.eup %561 }
 0x15f   : > { %v564_v34 = vpop.eup %563 }
 0x160   : > { %v566_v37 = vpop.eup %565 }
 0x161   : > { %v568_v41 = vpop.eup %567 }
 0x186   : > { %v507_v15 = vpop.f32.mrb[0].mxu0 }
 0x187   : > { %v378_v17 = vmul.f32 %v554_v14, %v507_v15  ;;  %v330_v18 = vpop.f32.mrb[1].mxu0 }
 0x188   : > { %v377_v19 = vmul.f32 %v556_v16, %v330_v18 }
 0x189   : > { %v386_v20 = vmax.f32 %v378_v17, 0.0 }
 0x18a   : > { %v385_v22 = vmax.f32 %v377_v19, 0.0  ;;  %v513_v23 = vpop.f32.mrb[0].mxu1 }
 0x18b   : > { %v394_v25 = vmin.f32 %v386_v20, 1.0  ;;  %v382_v26 = vmul.f32 %v558_v21, %v513_v23  ;;  %v350_v27 = vpop.f32.mrb[1].mxu1 }
 0x18c   : > { %v393_v28 = vmin.f32 %v385_v22, 1.0  ;;  %v381_v29 = vmul.f32 %v560_v24, %v350_v27 }
 0x18d   : > { %403 = vst.msk [vmem:[%s649_s26 + $0x8] sm:$0xff] %vm401_vm1, %v394_v25  ;;  %v390_v30 = vmax.f32 %v382_v26, 0.0 }
 0x18e   : > { %402 = vst.msk [vmem:[%s649_s26] sm:$0xff] %vm401_vm1, %v393_v28  ;;  %v389_v31 = vmax.f32 %v381_v29, 0.0 }
 0x18f   : > { %v398_v33 = vmin.f32 %v390_v30, 1.0 }
 0x190   : > { %v397_v35 = vmin.f32 %v389_v31, 1.0  ;;  %v516_v36 = vpop.f32.mrb[2].mxu1 }
 0x191   : > { %407 = vst.msk [vmem:[%s649_s26 + $0x28] sm:$0xff] %vm401_vm1, %v398_v33  ;;  %v510_v38 = vpop.f32.mrb[2].mxu0  ;;  %v384_v39 = vmul.f32 %v564_v34, %v516_v36  ;;  %v360_v40 = vpop.f32.mrb[3].mxu1 }
 0x192   : > { %406 = vst.msk [vmem:[%s649_s26 + $0x20] sm:$0xff] %vm401_vm1, %v397_v35  ;;  %v380_v42 = vmul.f32 %v562_v32, %v510_v38  ;;  %v340_v43 = vpop.f32.mrb[3].mxu0  ;;  %v383_v44 = vmul.f32 %v566_v37, %v360_v40 }
 0x193   : > { %v392_v45 = vmax.f32 %v384_v39, 0.0  ;;  %v379_v46 = vmul.f32 %v568_v41, %v340_v43 }
 0x194   : > { %v388_v47 = vmax.f32 %v380_v42, 0.0  ;;  %v391_v48 = vmax.f32 %v383_v44, 0.0 }
 0x195   : > { %v400_v49 = vmin.f32 %v392_v45, 1.0  ;;  %v387_v50 = vmax.f32 %v379_v46, 0.0 }
 0x196   : > { %v396_v51 = vmin.f32 %v388_v47, 1.0  ;;  %v399_v52 = vmin.f32 %v391_v48, 1.0 }
 0x197   : > { %409 = vst.msk [vmem:[%s649_s26 + $0x38] sm:$0xff] %vm401_vm1, %v400_v49  ;;  %v395_v53 = vmin.f32 %v387_v50, 1.0 }
 0x198   : > { %405 = vst.msk [vmem:[%s649_s26 + $0x18] sm:$0xff] %vm401_vm1, %v396_v51  ;;  %408 = vst.msk [vmem:[%s649_s26 + $0x30] sm:$0xff] %vm401_vm1, %v399_v52 }
 0x199   : > { %404 = vst.msk [vmem:[%s649_s26 + $0x10] sm:$0xff] %vm401_vm1, %v395_v53 }
 0x19a PF: > { %s12_s9 = sadd.s32 1, %s575_s9  }
 0x19b   : > { %p9_p4 = scmp.ge.s32.totalorder %s12_s9, 6  }
 0x19d   :  { %11 = sbr.rel (!%p9_p4) target bundleno = 1 (0x1), region = 58 }

</bundles_post_ra>
